<compile_context>
chip_gen: v5e
topology: v5e:2x2
jax: 0.10.0
libtpu: 0.0.40
codegen_flags: <defaults>
</compile_context>

<pallas_src>
import jax
import jax.numpy as jnp
from jax.experimental import pallas as pl
from jax.experimental.pallas import tpu as pltpu

HIDDEN = 768       # fixed by nn.Linear(768, num_tag)
LANES = 128
TM_MAX = 2048      # row-tile cap (VMEM-safe on v7x, amortizes step overhead)


def _cdiv(a, b):
    return (a + b - 1) // b


def _round_up(x, m):
    return ((x + m - 1) // m) * m


def _pick_tm(n):
    """Row tile: near-full last tile, multiple of 128 for larger inputs,
    >= 2 tiles when there is enough work (v7x megacore), capped at TM_MAX."""
    if n <= 4 * LANES:
        return n                       # tiny input: one full-array tile
    tiles = max(2, _cdiv(n, TM_MAX))
    return min(TM_MAX, _round_up(_cdiv(n, tiles), LANES))


def _make_head_loss_kernel(n_rows, tm):
    def kernel(x_ref, w_ref, b_ref, tgt_ref, logits_ref, part_ref):
        # Linear head: [tm, 768] bf16 @ [768, 128] bf16 -> f32 (MXU), + bias.
        logits = jnp.dot(x_ref[...], w_ref[...],
                         preferred_element_type=jnp.float32)
        logits = logits + b_ref[...]          # padded cols carry bias = -1e30
        # bf16 writeback (halves logits HBM traffic); OOB rows of the ragged
        # last tile are dropped by the masked store.
        logits_ref[...] = logits.astype(logits_ref.dtype)

        # Masked cross-entropy (== CrossEntropyLoss with ignore_index=-1).
        # Padded columns are ~-1e30 -> exp == 0, so the logsumexp over all
        # 128 lanes equals the logsumexp over num_tag.
        m = jnp.max(logits, axis=-1, keepdims=True)
        lse = m + jnp.log(jnp.sum(jnp.exp(logits - m), axis=-1, keepdims=True))
        classes = jax.lax.broadcasted_iota(jnp.int32, logits.shape, 1)
        tgt = tgt_ref[...]                                   # [tm, 1] int32
        tgt_logit = jnp.sum(jnp.where(classes == tgt, logits, 0.0),
                            axis=-1, keepdims=True)

        # Active = real row (ragged last tile) AND target != ignore_index.
        row = (jax.lax.broadcasted_iota(jnp.int32, (tm, 1), 0)
               + pl.program_id(0) * tm)
        active = jnp.logical_and(tgt >= 0, row < n_rows)     # [tm, 1] bool
        # where (not multiply) so garbage/NaN rows of the last tile never leak.
        nll = jnp.where(active, lse - tgt_logit, 0.0)
        nll_sum = jnp.sum(nll)
        cnt = jnp.sum(active.astype(jnp.float32))

        # Per-tile partial in a lane-dense [1, 1, 128] tile: lane0 = sum(NLL),
        # lane1 = count.  Final reduction happens in JAX (grid axis parallel).
        lane = jax.lax.broadcasted_iota(jnp.int32, part_ref.shape, 2)
        part_ref[...] = jnp.where(lane == 0, nll_sum,
                                  jnp.where(lane == 1, cnt, 0.0))

    return kernel


def tag_head_and_loss(hidden, weight, bias, target, mask, *, num_tag):
    """hidden: [N, 768] bf16 (preferred; f32 also works, just more HBM read),
       weight: [768, num_tag] f32, bias: [num_tag] f32,
       target/mask: [N] int32.
       Returns (logits [N, num_tag] f32, scalar mean NLL over active tokens)."""
    n, h = hidden.shape
    assert h == HIDDEN
    nt_pad = _round_up(num_tag, LANES)

    tm = _pick_tm(n)
    n_tiles = _cdiv(n, tm)

    # Tiny one-time prep (W is 768 x num_tag, target/mask are 4 B/row):
    w = jnp.pad(weight.astype(hidden.dtype),
                ((0, 0), (0, nt_pad - num_tag)))
    # Padded logit columns get a huge negative bias -> excluded from LSE.
    b = jnp.pad(bias.astype(jnp.float32).reshape(1, num_tag),
                ((0, 0), (0, nt_pad - num_tag)), constant_values=-1e30)
    # Merge target + mask into ONE stream: inactive tokens -> ignore_index -1.
    tgt = jnp.where(mask.astype(jnp.int32) == 1,
                    target.astype(jnp.int32), -1).reshape(n, 1)

    kernel = _make_head_loss_kernel(n, tm)

    logits_pad, parts = pl.pallas_call(
        kernel,
        out_shape=(jax.ShapeDtypeStruct((n, nt_pad), jnp.bfloat16),
                   jax.ShapeDtypeStruct((n_tiles, 1, LANES), jnp.float32)),
        grid_spec=pltpu.PrefetchScalarGridSpec(
            num_scalar_prefetch=0,
            grid=(n_tiles,),
            in_specs=[
                pl.BlockSpec((tm, HIDDEN), lambda i: (i, 0)),     # hidden rows
                pl.BlockSpec((HIDDEN, nt_pad), lambda i: (0, 0)), # W (resident)
                pl.BlockSpec((1, nt_pad), lambda i: (0, 0)),      # bias
                pl.BlockSpec((tm, 1), lambda i: (i, 0)),          # merged tgt/mask
            ],
            out_specs=[
                pl.BlockSpec((tm, nt_pad), lambda i: (i, 0)),     # logits (lane-dense)
                pl.BlockSpec((1, 1, LANES), lambda i: (i, 0, 0)), # per-tile partials
            ],
        ),
        compiler_params=pltpu.CompilerParams(
            dimension_semantics=("parallel",),        # shard tiles across TCs (v7x)
            vmem_limit_bytes=48 * 1024 * 1024),
    )(hidden, w, b, tgt)

    logits = logits_pad[:, :num_tag].astype(jnp.float32)
    nll_total = jnp.sum(parts[:, 0, 0])
    cnt_total = jnp.sum(parts[:, 0, 1])
    # Note: matches PyTorch CrossEntropyLoss — NaN if no token is active.
    loss = nll_total / cnt_total
    return logits, loss


def init_params(key, num_tag, vocab_size=100, type_vocab=2, max_seq=64):
    ks = jax.random.split(key, 4)
    return {
        "word_emb": jax.random.normal(ks[0], (vocab_size, HIDDEN), jnp.float32) * 0.02,
        "pos_emb":  jax.random.normal(ks[1], (max_seq, HIDDEN), jnp.float32) * 0.02,
        "type_emb": jax.random.normal(ks[2], (type_vocab, HIDDEN), jnp.float32) * 0.02,
        "out_tag_w": jax.random.normal(ks[3], (HIDDEN, num_tag), jnp.float32) * 0.02,
        "out_tag_b": jnp.zeros((num_tag,), jnp.float32),
    }


def bert_stub(params, token_ids, token_type_ids):
    # TODO(synk): the 12-layer pretrained BERT encoder (self.bert = MODEL) is
    # external; approximated here by embedding-sum + LayerNorm -> [B, T, 768].
    _, t = token_ids.shape
    h = (params["word_emb"][token_ids]
         + params["type_emb"][token_type_ids]
         + params["pos_emb"][jnp.arange(t)][None, :, :])
    mu = jnp.mean(h, axis=-1, keepdims=True)
    var = jnp.var(h, axis=-1, keepdims=True)
    # bf16 cast fused into the encoder's final normalization -> the head
    # kernel reads 1.5 KB/row instead of 3 KB/row, with no extra HBM pass.
    return ((h - mu) / jnp.sqrt(var + 1e-12)).astype(jnp.bfloat16)


def ner_forward(params, token_ids, attention_mask, token_type_ids,
                target_tags, num_tag):
    b, t = token_ids.shape
    o1 = bert_stub(params, token_ids, token_type_ids)
    bo_tag = o1  # nn.Dropout(0.3): identity in eval mode
    hidden = bo_tag.reshape(b * t, HIDDEN)
    logits, loss = tag_head_and_loss(
        hidden,
        params["out_tag_w"],
        params["out_tag_b"],
        target_tags.reshape(b * t),
        attention_mask.reshape(b * t),
        num_tag=num_tag,
    )
    return logits.reshape(b, t, num_tag), loss


if __name__ == "__main__":
    num_tag = 9
    B, T = 2, 8
    key = jax.random.PRNGKey(0)
    pkey, k1, k2 = jax.random.split(key, 3)
    params = init_params(pkey, num_tag)

    token_ids = jax.random.randint(k1, (B, T), 0, 100, dtype=jnp.int32)
    token_type_ids = jnp.zeros((B, T), jnp.int32)
    attention_mask = jnp.concatenate(
        [jnp.ones((B, 6), jnp.int32), jnp.zeros((B, 2), jnp.int32)], axis=1)
    target_tags = jax.random.randint(k2, (B, T), 0, num_tag, dtype=jnp.int32)

    logits, loss = ner_forward(params, token_ids, attention_mask,
                               token_type_ids, target_tags, num_tag)
    jax.block_until_ready((logits, loss))
    assert logits.shape == (B, T, num_tag)
    assert loss.shape == ()
    assert bool(jnp.isfinite(loss))
    print("KERNEL_OK")
</pallas_src>

<mosaic_0001>
module attributes {stable_mosaic.version = 11 : i64} {
  func.func @kernel(%arg0: i32, %arg1: memref<16x768xbf16, #tpu.memory_space<vmem>>, %arg2: memref<768x128xbf16, #tpu.memory_space<vmem>>, %arg3: memref<1x128xf32, #tpu.memory_space<vmem>>, %arg4: memref<16x1xi32, #tpu.memory_space<vmem>>, %arg5: memref<16x128xbf16, #tpu.memory_space<vmem>>, %arg6: memref<1x1x128xf32, #tpu.memory_space<vmem>>) attributes {dimension_semantics = [#tpu.dimension_semantics<parallel>], iteration_bounds = array<i64: 1>, scalar_prefetch = 0 : i64, scratch_operands = 0 : i64, tpu.core_type = #tpu.core_type<tc>, window_params = [{transform_indices = @transform_0, window_bounds = array<i64: 16, 768>}, {pipeline_mode = #tpu.pipeline_mode<synchronous>, transform_indices = @transform_1, window_bounds = array<i64: 768, 128>}, {pipeline_mode = #tpu.pipeline_mode<synchronous>, transform_indices = @transform_2, window_bounds = array<i64: 1, 128>}, {transform_indices = @transform_3, window_bounds = array<i64: 16, 1>}, {transform_indices = @transform_4, window_bounds = array<i64: 16, 128>}, {transform_indices = @transform_5, window_bounds = array<i64: 1, 1, 128>}]} {
    %c0 = arith.constant 0 : index
    %c0_0 = arith.constant 0 : index
    %0 = vector.load %arg1[%c0, %c0_0] : memref<16x768xbf16, #tpu.memory_space<vmem>>, vector<16x768xbf16>
    %c0_1 = arith.constant 0 : index
    %c0_2 = arith.constant 0 : index
    %1 = vector.load %arg2[%c0_1, %c0_2] : memref<768x128xbf16, #tpu.memory_space<vmem>>, vector<768x128xbf16>
    %cst = arith.constant dense<0.000000e+00> : vector<16x128xf32>
    %2 = tpu.matmul %0, %1, %cst {dimension_numbers = #tpu.dot_dimension_numbers<[1], [0], [0], [1], [0, 0, 1, 1], [], []>} : vector<16x768xbf16>, vector<768x128xbf16>, vector<16x128xf32> -> vector<16x128xf32>
    %c0_3 = arith.constant 0 : index
    %c0_4 = arith.constant 0 : index
    %3 = vector.load %arg3[%c0_3, %c0_4] : memref<1x128xf32, #tpu.memory_space<vmem>>, vector<1x128xf32>
    %4 = vector.broadcast %3 : vector<1x128xf32> to vector<16x128xf32>
    %5 = arith.addf %2, %4 : vector<16x128xf32>
    %6 = arith.truncf %5 : vector<16x128xf32> to vector<16x128xbf16>
    %c0_5 = arith.constant 0 : index
    %c0_6 = arith.constant 0 : index
    %7 = vector.load %arg5[%c0_5, %c0_6] : memref<16x128xbf16, #tpu.memory_space<vmem>>, vector<16x128xbf16>
    tpu.vector_store %arg5[%c0_5, %c0_6], %6 {strides = array<i32>} : memref<16x128xbf16, #tpu.memory_space<vmem>>, vector<16x128xbf16>,
    %cst_7 = arith.constant dense<0xFF800000> : vector<16xf32>
    %8 = vector.multi_reduction <maximumf>, %5, %cst_7 [1] : vector<16x128xf32> to vector<16xf32>
    %9 = vector.shape_cast %8 : vector<16xf32> to vector<16x1xf32>
    %10 = vector.broadcast %9 : vector<16x1xf32> to vector<16x128xf32>
    %11 = arith.subf %5, %10 : vector<16x128xf32>
    %12 = math.exp %11 : vector<16x128xf32>
    %cst_8 = arith.constant dense<0.000000e+00> : vector<16xf32>
    %13 = vector.multi_reduction <add>, %12, %cst_8 [1] : vector<16x128xf32> to vector<16xf32>
    %14 = vector.shape_cast %13 : vector<16xf32> to vector<16x1xf32>
    %15 = math.log %14 : vector<16x1xf32>
    %16 = arith.addf %9, %15 : vector<16x1xf32>
    %17 = tpu.iota {dimensions = array<i32: 1>} : vector<16x128xi32>
    %c0_9 = arith.constant 0 : index
    %c0_10 = arith.constant 0 : index
    %18 = vector.load %arg4[%c0_9, %c0_10] : memref<16x1xi32, #tpu.memory_space<vmem>>, vector<16x1xi32>
    %19 = vector.broadcast %18 : vector<16x1xi32> to vector<16x128xi32>
    %20 = arith.cmpi eq, %17, %19 : vector<16x128xi32>
    %cst_11 = arith.constant 0.000000e+00 : f32
    %21 = vector.broadcast %cst_11 : f32 to vector<16x128xf32>
    %22 = arith.select %20, %5, %21 : vector<16x128xi1>, vector<16x128xf32>
    %cst_12 = arith.constant dense<0.000000e+00> : vector<16xf32>
    %23 = vector.multi_reduction <add>, %22, %cst_12 [1] : vector<16x128xf32> to vector<16xf32>
    %24 = vector.shape_cast %23 : vector<16xf32> to vector<16x1xf32>
    %25 = tpu.iota {dimensions = array<i32: 0>} : vector<16x1xi32>
    %c16_i32 = arith.constant 16 : i32
    %26 = arith.muli %arg0, %c16_i32 : i32
    %27 = vector.broadcast %26 : i32 to vector<16x1xi32>
    %28 = arith.addi %25, %27 : vector<16x1xi32>
    %c0_i32 = arith.constant 0 : i32
    %29 = vector.broadcast %c0_i32 : i32 to vector<16x1xi32>
    %30 = arith.cmpi sge, %18, %29 : vector<16x1xi32>
    %c16_i32_13 = arith.constant 16 : i32
    %31 = vector.broadcast %c16_i32_13 : i32 to vector<16x1xi32>
    %32 = arith.cmpi slt, %28, %31 : vector<16x1xi32>
    %33 = arith.andi %30, %32 : vector<16x1xi1>
    %34 = arith.subf %16, %24 : vector<16x1xf32>
    %cst_14 = arith.constant 0.000000e+00 : f32
    %35 = vector.broadcast %cst_14 : f32 to vector<16x1xf32>
    %36 = arith.select %33, %34, %35 : vector<16x1xi1>, vector<16x1xf32>
    %37 = vector.shape_cast %36 : vector<16x1xf32> to vector<1x16x1xf32>
    %cst_15 = arith.constant dense<0.000000e+00> : vector<1xf32>
    %38 = vector.multi_reduction <add>, %37, %cst_15 [1, 2] : vector<1x16x1xf32> to vector<1xf32>
    %39 = vector.shape_cast %38 : vector<1xf32> to vector<1x1x1xf32>
    %40 = vector.extract %39[0, 0, 0] : f32 from vector<1x1x1xf32>
    %41 = arith.extui %33 : vector<16x1xi1> to vector<16x1xi32>
    %42 = arith.sitofp %41 : vector<16x1xi32> to vector<16x1xf32>
    %43 = vector.shape_cast %42 : vector<16x1xf32> to vector<1x16x1xf32>
    %cst_16 = arith.constant dense<0.000000e+00> : vector<1xf32>
    %44 = vector.multi_reduction <add>, %43, %cst_16 [1, 2] : vector<1x16x1xf32> to vector<1xf32>
    %45 = vector.shape_cast %44 : vector<1xf32> to vector<1x1x1xf32>
    %46 = vector.extract %45[0, 0, 0] : f32 from vector<1x1x1xf32>
    %47 = tpu.iota {dimensions = array<i32: 2>} : vector<1x1x128xi32>
    %c0_i32_17 = arith.constant 0 : i32
    %48 = vector.broadcast %c0_i32_17 : i32 to vector<1x1x128xi32>
    %49 = arith.cmpi eq, %47, %48 : vector<1x1x128xi32>
    %c1_i32 = arith.constant 1 : i32
    %50 = vector.broadcast %c1_i32 : i32 to vector<1x1x128xi32>
    %51 = arith.cmpi eq, %47, %50 : vector<1x1x128xi32>
    %cst_18 = arith.constant 0.000000e+00 : f32
    %52 = vector.broadcast %46 : f32 to vector<1x1x128xf32>
    %53 = vector.broadcast %cst_18 : f32 to vector<1x1x128xf32>
    %54 = arith.select %51, %52, %53 : vector<1x1x128xi1>, vector<1x1x128xf32>
    %55 = vector.broadcast %40 : f32 to vector<1x1x128xf32>
    %56 = arith.select %49, %55, %54 : vector<1x1x128xi1>, vector<1x1x128xf32>
    %c0_19 = arith.constant 0 : index
    %c0_20 = arith.constant 0 : index
    %c0_21 = arith.constant 0 : index
    %57 = vector.load %arg6[%c0_19, %c0_20, %c0_21] : memref<1x1x128xf32, #tpu.memory_space<vmem>>, vector<1x1x128xf32>
    tpu.vector_store %arg6[%c0_19, %c0_20, %c0_21], %56 {strides = array<i32>} : memref<1x1x128xf32, #tpu.memory_space<vmem>>, vector<1x1x128xf32>,
    return
  }
  func.func @transform_0(%arg0: i32) -> (i32, i32) {
    %c0_i32 = arith.constant 0 : i32
    %c0_i32_0 = arith.constant 0 : i32
    return %arg0, %c0_i32 : i32, i32
  }
  func.func @transform_1(%arg0: i32) -> (i32, i32) {
    %c0_i32 = arith.constant 0 : i32
    %c0_i32_0 = arith.constant 0 : i32
    %c0_i32_1 = arith.constant 0 : i32
    return %c0_i32, %c0_i32_0 : i32, i32
  }
  func.func @transform_2(%arg0: i32) -> (i32, i32) {
    %c0_i32 = arith.constant 0 : i32
    %c0_i32_0 = arith.constant 0 : i32
    %c0_i32_1 = arith.constant 0 : i32
    return %c0_i32, %c0_i32_0 : i32, i32
  }
  func.func @transform_3(%arg0: i32) -> (i32, i32) {
    %c0_i32 = arith.constant 0 : i32
    %c0_i32_0 = arith.constant 0 : i32
    return %arg0, %c0_i32 : i32, i32
  }
  func.func @transform_4(%arg0: i32) -> (i32, i32) {
    %c0_i32 = arith.constant 0 : i32
    %c0_i32_0 = arith.constant 0 : i32
    return %arg0, %c0_i32 : i32, i32
  }
  func.func @transform_5(%arg0: i32) -> (i32, i32, i32) {
    %c0_i32 = arith.constant 0 : i32
    %c0_i32_0 = arith.constant 0 : i32
    %c0_i32_1 = arith.constant 0 : i32
    return %arg0, %c0_i32, %c0_i32_0 : i32, i32, i32
  }
}

</mosaic_0001>

<bundles_post_ra>
// kernel: tpu_custom_call.1
= control target key start
LH: loop header
LB: loop body
LE: loop exit
PB: predicated region body
PF: predicated region fallthrough
CT: control target
= control target key end

     0   :  { %11 = vsyncpa [#allocation3], 0  ;;  %s1191_s0 = inlined_call_operand.hbm [shape: bf16[16,768], index: 0, kind: input, shape index: {}]   ;;  %s1192_s1 = inlined_call_operand.hbm [shape: bf16[768,128], index: 1, kind: input, shape index: {}]   ;;  %s1193_s2 = inlined_call_operand.vmem [shape: f32[1,128], index: 2, kind: input, shape index: {}]   ;;  %s1194_s3 = inlined_call_operand.vmem [shape: s32[16,1], index: 3, kind: input, shape index: {}]   ;;  %s1195_s4 = inlined_call_operand.hbm [shape: bf16[16,128], index: 4, kind: output, shape index: {0}]   ;;  %s1196_s5 = inlined_call_operand.hbm [shape: f32[1,1,128], index: 5, kind: output, shape index: {1}]  }
   0x1   :  { %12 = vsyncpa [#allocation6], 0 }
   0x2   :  { %13 = vsyncpa [#allocation4], 0 }
   0x3   :  { %14 = vsyncpa [#allocation9], 0  ;;  %s19_s20 = sshll.u32 %s1191_s0, 4  ;;  %s1098_s21 = smov [#allocation2]   ;;  %s20_s20 = int_to_ptr.hbm [resolvable:$true] %s19_s20 }
   0x4   :  { %s21_s22 = sshll.u32 %s1098_s21, 4  ;;  %s32_s25 = sshll.u32 %s1192_s1, 4  ;;  %s22_s22 = int_to_ptr.vmem [resolvable:$true] %s21_s22  ;;  %s33_s25 = int_to_ptr.hbm [resolvable:$true] %s32_s25 }
   0x5   :  { %s1099_s26 = smov 384   ;;  %s1100_s27 = smov 24  }
   0x6   :  { %27 = dma.hbm_to_vmem [thread:$0]  %s20_s20, 768, %s22_s22, [#allocation3], %s1099_s26, %s1099_s26, %s1100_s27  }
   0x7   :  { %s1101_s28 = smov [#allocation5]   ;;  %s1102_s30 = smov 64  }
   0x8   :  { %s34_s29 = sshll.u32 %s1101_s28, 4  ;;  %s1103_s6 = smov 4   ;;  %s35_s29 = int_to_ptr.vmem [resolvable:$true] %s34_s29 }
   0x9   :  { %40 = dma.hbm_to_vmem [thread:$0]  %s33_s25, 6144, %s35_s29, [#allocation6], %s1102_s30, %s1102_s30, %s1103_s6  }
   0xa   :  { %1090 = dma.done.wait [#allocation3], 768  }
   0xb   :  { %1091 = vsyncadd [#allocation3], 4294966528 }
   0xc   :  { %1092 = dma.done.wait [#allocation6], 6144  }
   0xd   :  { %1093 = vsyncadd [#allocation6], 4294961152  ;;  %v923_v0 = vld [vmem:[#allocation5 + $0x38] sm:$0xff]  ;;  %v922_v4 = vld [vmem:[#allocation5 + $0x30] sm:$0xff]  ;;  %v1104_v48 = vmov 0   ;;  %vm620_vm4 = vcmask 7168  }
   0xe   :  { %v931_v1 = vld [vmem:[#allocation5 + $0x78] sm:$0xff]  ;;  %477 = vmatpush.bf16.msra.mxu0 %v923_v0  ;;  %v930_v5 = vld [vmem:[#allocation5 + $0x70] sm:$0xff]  ;;  %v921_v8 = vld [vmem:[#allocation5 + $0x28] sm:$0xff]  ;;  %983 = vset.pattern.permute.xlu1 %v1104_v48  ;;  %s662_s13 = sshll.u32 %s1195_s4, 4  ;;  %s1107_s4 = smov [#allocation8]   ;;  %s663_s13 = int_to_ptr.hbm [resolvable:$true] %s662_s13 }
   0xf   :  { %v939_v2 = vld [vmem:[#allocation5 + $0xb8] sm:$0xff]  ;;  %491 = vmatpush.bf16.msra.mxu1 %v931_v1  ;;  %v938_v6 = vld [vmem:[#allocation5 + $0xb0] sm:$0xff]  ;;  %v929_v9 = vld [vmem:[#allocation5 + $0x68] sm:$0xff]  ;;  %984 = vset.pattern.permute.xlu0 %v1104_v48  ;;  %s674_s14 = sshll.u32 %s1107_s4, 4  ;;  %s676_s18 = sshll.u32 %s1196_s5, 4  ;;  %s675_s14 = int_to_ptr.vmem [resolvable:$true] %s674_s14  ;;  %s677_s18 = int_to_ptr.hbm [resolvable:$true] %s676_s18 }
  0x10   :  { %v947_v3 = vld [vmem:[#allocation5 + $0xf8] sm:$0xff]  ;;  %505 = vmatpush.bf16.msra.mxu2 %v939_v2  ;;  %v946_v7 = vld [vmem:[#allocation5 + $0xf0] sm:$0xff]  ;;  %v937_v10 = vld [vmem:[#allocation5 + $0xa8] sm:$0xff] }
  0x11   :  { %519 = vmatpush.bf16.msra.mxu3 %v947_v3  ;;  %v945_v11 = vld [vmem:[#allocation5 + $0xe8] sm:$0xff]  ;;  %v920_v12 = vld [vmem:[#allocation5 + $0x20] sm:$0xff]  ;;  %v919_v16 = vld [vmem:[#allocation5 + $0x18] sm:$0xff] }
  0x12   :  { %478 = vmatpush.bf16.msra.mxu0 %v922_v4  ;;  %v928_v13 = vld [vmem:[#allocation5 + $0x60] sm:$0xff]  ;;  %v927_v17 = vld [vmem:[#allocation5 + $0x58] sm:$0xff]  ;;  %v918_v20 = vld [vmem:[#allocation5 + $0x10] sm:$0xff] }
  0x13   :  { %492 = vmatpush.bf16.msra.mxu1 %v930_v5  ;;  %v936_v14 = vld [vmem:[#allocation5 + $0xa0] sm:$0xff]  ;;  %v935_v18 = vld [vmem:[#allocation5 + $0x98] sm:$0xff]  ;;  %v926_v21 = vld [vmem:[#allocation5 + $0x50] sm:$0xff] }
  0x14   :  { %506 = vmatpush.bf16.msra.mxu2 %v938_v6  ;;  %v944_v15 = vld [vmem:[#allocation5 + $0xe0] sm:$0xff]  ;;  %v943_v19 = vld [vmem:[#allocation5 + $0xd8] sm:$0xff]  ;;  %v934_v22 = vld [vmem:[#allocation5 + $0x90] sm:$0xff] }
  0x15   :  { %520 = vmatpush.bf16.msra.mxu3 %v946_v7  ;;  %v942_v23 = vld [vmem:[#allocation5 + $0xd0] sm:$0xff]  ;;  %v917_v24 = vld [vmem:[#allocation5 + $0x8] sm:$0xff]  ;;  %v916_v28 = vld [vmem:[#allocation5] sm:$0xff] }
  0x16   :  { %479 = vmatpush.bf16.msra.mxu0 %v921_v8  ;;  %v925_v25 = vld [vmem:[#allocation5 + $0x48] sm:$0xff]  ;;  %v924_v29 = vld [vmem:[#allocation5 + $0x40] sm:$0xff]  ;;  %v694_v30 = vld [vmem:[#allocation2] sm:$0xf] }
  0x17   :  { %493 = vmatpush.bf16.msra.mxu1 %v929_v9  ;;  %v933_v26 = vld [vmem:[#allocation5 + $0x88] sm:$0xff]  ;;  %v910_v32 = vld [vmem:[#allocation2 + $0x4] sm:$0xf]  ;;  %v955_v34 = vld [vmem:[#allocation5 + $0x138] sm:$0xff] }
  0x18   :  { %507 = vmatpush.bf16.msra.mxu2 %v937_v10  ;;  %v941_v27 = vld [vmem:[#allocation5 + $0xc8] sm:$0xff]  ;;  %v963_v35 = vld [vmem:[#allocation5 + $0x178] sm:$0xff]  ;;  %v932_v36 = vld [vmem:[#allocation5 + $0x80] sm:$0xff] }
  0x19   :  { %521 = vmatpush.bf16.msra.mxu3 %v945_v11  ;;  %v913_v31 = vld [vmem:[#allocation2 + $0x14] sm:$0xf0]  ;;  %v696_v33 = vld [vmem:[#allocation2 + $0x18] sm:$0xf0]  ;;  %v940_v37 = vld [vmem:[#allocation5 + $0xc0] sm:$0xff] }
  0x1a   :  { %480 = vmatpush.bf16.msra.mxu0 %v920_v12  ;;  %v702_v38 = vld [vmem:[#allocation2 + $0x8] sm:$0xf]  ;;  %v914_v39 = vld [vmem:[#allocation2 + $0x1c] sm:$0xf0]  ;;  %v695_v40 = vor.u32 %v913_v31, %v694_v30  ;;  %v911_v41 = vld [vmem:[#allocation2 + $0xc] sm:$0xf]  ;;  %v699_v43 = vor.u32 %v910_v32, %v696_v33 }
  0x1b   :  { %494 = vmatpush.bf16.msra.mxu1 %v928_v13  ;;  %v704_v42 = vld [vmem:[#allocation2 + $0x20] sm:$0xf0]  ;;  %v703_v46 = vor.u32 %v914_v39, %v702_v38  ;;  %v953_v50 = vld [vmem:[#allocation5 + $0x128] sm:$0xff]  ;;  %v952_v52 = vld [vmem:[#allocation5 + $0x120] sm:$0xff] }
  0x1c   :  { %508 = vmatpush.bf16.msra.mxu2 %v936_v14  ;;  %v954_v44 = vld [vmem:[#allocation5 + $0x130] sm:$0xff]  ;;  %v707_v47 = vor.u32 %v911_v41, %v704_v42  ;;  %v961_v51 = vld [vmem:[#allocation5 + $0x168] sm:$0xff]  ;;  %v960_v53 = vld [vmem:[#allocation5 + $0x160] sm:$0xff] }
  0x1d   :  { %522 = vmatpush.bf16.msra.mxu3 %v944_v15  ;;  %v962_v45 = vld [vmem:[#allocation5 + $0x170] sm:$0xff]  ;;  %v1156_v54 = vld [vmem:[%s1194_s3 + $0x8] sm:$0xff]  ;;  %v949_v59 = vld [vmem:[#allocation5 + $0x108] sm:$0xff] }
  0x1e   :  { %481 = vmatpush.bf16.msra.mxu0 %v919_v16  ;;  %v1150_v49 = vld [vmem:[%s1194_s3] sm:$0xff]  ;;  %v951_v55 = vld [vmem:[#allocation5 + $0x118] sm:$0xff]  ;;  %v957_v60 = vld [vmem:[#allocation5 + $0x148] sm:$0xff]  ;;  %vm611_vm3 = vcmp.ge.s32.totalorder %v1156_v54, 0 }
  0x1f   :  { %495 = vmatpush.bf16.msra.mxu1 %v927_v17  ;;  %590 = vperm.xlu1 %983, %v1150_v49   ;;  %v959_v56 = vld [vmem:[#allocation5 + $0x158] sm:$0xff]  ;;  %v950_v57 = vld [vmem:[#allocation5 + $0x110] sm:$0xff]  ;;  %v948_v61 = vld [vmem:[#allocation5 + $0x100] sm:$0xff]  ;;  %vm610_vm2 = vcmp.ge.s32.totalorder %v1150_v49, 0 }
  0x20   :  { %509 = vmatpush.bf16.msra.mxu2 %v935_v18  ;;  %v958_v58 = vld [vmem:[#allocation5 + $0x150] sm:$0xff]  ;;  %v956_v62 = vld [vmem:[#allocation5 + $0x140] sm:$0xff]  ;;  %v915_v0 = vld [vmem:[#allocation2 + $0x24] sm:$0xf0] }
  0x21   :  { %523 = vmatpush.bf16.msra.mxu3 %v943_v19  ;;  %v710_v63 = vld [vmem:[#allocation2 + $0x10] sm:$0xf]  ;;  %v912_v1 = vld [vmem:[#allocation2 + $0x14] sm:$0xf]  ;;  %v712_v2 = vld [vmem:[#allocation2 + $0x28] sm:$0xf0] }
  0x22   :  { %482 = vmatpush.bf16.msra.mxu0 %v918_v20  ;;  %v711_v3 = vor.u32 %v915_v0, %v710_v63  ;;  %v715_v4 = vor.u32 %v912_v1, %v712_v2  ;;  %v985_v7 = vld [vmem:[%s1193_s2] ss:$0 sm:$0xff]  ;;  %s1106_s2 = smov [#allocation7]  }
  0x23   :  { %496 = vmatpush.bf16.msra.mxu1 %v926_v21  ;;  %s660_s10 = sshll.u32 %s1106_s2, 4  ;;  %s661_s10 = int_to_ptr.vmem [resolvable:$true] %s660_s10 }
  0x24   :  { %510 = vmatpush.bf16.msra.mxu2 %v934_v22 }
  0x25   :  { %524 = vmatpush.bf16.msra.mxu3 %v942_v23 }
  0x26   :  { %483 = vmatpush.bf16.msra.mxu0 %v917_v24 }
  0x27   :  { %497 = vmatpush.bf16.msra.mxu1 %v925_v25  ;;  %593 = vperm.xlu1 %983, %v1156_v54  }
  0x28   :  { %511 = vmatpush.bf16.msra.mxu2 %v933_v26  ;;  %v585_v26 = vlaneseq }
  0x29   :  { %525 = vmatpush.bf16.msra.mxu3 %v941_v27 }
  0x2a   :  { %484 = vmatpush.bf16.msra.mxu0 %v916_v28 }
  0x2b   :  { %498 = vmatpush.bf16.msra.mxu1 %v924_v29  ;;  %v1162_v29 = vand.u32 127, %v585_v26 }
  0x2c   :  { %512 = vmatpush.bf16.msra.mxu2 %v932_v36 }
  0x2d   :  { %526 = vmatpush.bf16.msra.mxu3 %v940_v37  ;;  %485 = vmatmul.bf16.vlgmr.msra.gmra.mxu0 %v695_v40  ;;  %vm650_vm5 = vcmp.eq.s32.totalorder %v1162_v29, 1  ;;  %vm649_vm6 = vcmp.eq.s32.totalorder %v1162_v29, 0 }
  0x2e   :  { %533 = vmatpush.bf16.msrb.mxu0 %v955_v34  ;;  %499 = vmatmul.bf16.vlgmr.msra.gmra.mxu1 %v699_v43 }
  0x2f   :  { %547 = vmatpush.bf16.msrb.mxu1 %v963_v35  ;;  %513 = vmatmul.bf16.vlgmr.msra.gmra.mxu2 %v703_v46 }
  0x30   :  { %527 = vmatmul.bf16.vlgmr.msra.gmra.mxu3 %v707_v47 }
  0x32   :  { %534 = vmatpush.bf16.msrb.mxu0 %v954_v44 }
  0x33   :  { %548 = vmatpush.bf16.msrb.mxu1 %v962_v45  ;;  %v1105_v45 = vmov 0.0  }
  0x34   :  { %v908_v46 = vsel %vm610_vm2, 1.0, %v1105_v45  ;;  %v909_v47 = vsel %vm611_vm3, 1.0, %v1105_v45 }
  0x35   :  { %v637_v48 = vsel %vm620_vm4, %v908_v46, 0.0 }
  0x36   :  { %535 = vmatpush.bf16.msrb.mxu0 %v953_v50  ;;  %v638_v50 = vsel %vm620_vm4, %v909_v47, 0.0 }
  0x37   :  { %549 = vmatpush.bf16.msrb.mxu1 %v961_v51  ;;  %v639_v51 = vadd.f32 %v638_v50, %v637_v48 }
  0x3a   :  { %536 = vmatpush.bf16.msrb.mxu0 %v952_v52 }
  0x3b   :  { %550 = vmatpush.bf16.msrb.mxu1 %v960_v53 }
  0x3e   :  { %537 = vmatpush.bf16.msrb.mxu0 %v951_v55 }
  0x3f   :  { %551 = vmatpush.bf16.msrb.mxu1 %v959_v56 }
  0x42   :  { %538 = vmatpush.bf16.msrb.mxu0 %v950_v57 }
  0x43   :  { %552 = vmatpush.bf16.msrb.mxu1 %v958_v58 }
  0x46   :  { %539 = vmatpush.bf16.msrb.mxu0 %v949_v59 }
  0x47   :  { %553 = vmatpush.bf16.msrb.mxu1 %v957_v60 }
  0x4a   :  { %540 = vmatpush.bf16.msrb.mxu0 %v948_v61 }
  0x4b   :  { %554 = vmatpush.bf16.msrb.mxu1 %v956_v62 }
  0x4d   :  { %541 = vmatmul.bf16.vlgmr.msrb.gmra.mxu0 %v711_v3 }
  0x4e   :  { %555 = vmatmul.bf16.vlgmr.msrb.gmra.mxu1 %v715_v4 }
  0x91   :  { %v591_v16 = vpop.permute.xlu1 %590 }
  0x92   :  { %vm595_vm1 = vcmp.eq.s32.totalorder %v1162_v29, %v591_v16 }
  0x99   :  { %v594_v28 = vpop.permute.xlu1 %593 }
  0x9a   :  { %vm596_vm0 = vcmp.eq.s32.totalorder %v1162_v29, %v594_v28 }
  0xaa   :  { %v486_v5 = vpop.f32.mrf.mxu0 }
  0xab   :  { %v500_v6 = vpop.f32.mrf.mxu1  ;;  %v487_v8 = vadd.f32 %v985_v7, %v486_v5 }
  0xad   :  { %v501_v10 = vadd.f32 %v500_v6, %v487_v8 }
  0xb2   :  { %v514_v9 = vpop.f32.mrf.mxu2  ;;  %v488_v11 = vpop.f32.mrf.mxu0 }
  0xb3   :  { %v502_v12 = vpop.f32.mrf.mxu1  ;;  %v528_v13 = vpop.f32.mrf.mxu3  ;;  %v515_v14 = vadd.f32 %v514_v9, %v501_v10  ;;  %v489_v15 = vadd.f32 %v985_v7, %v488_v11 }
  0xb5   :  { %v529_v17 = vadd.f32 %v528_v13, %v515_v14  ;;  %v503_v18 = vadd.f32 %v502_v12, %v489_v15 }
  0xba   :  { %v516_v19 = vpop.f32.mrf.mxu2 }
  0xbb   :  { %v517_v23 = vadd.f32 %v516_v19, %v503_v18  ;;  %v530_v25 = vpop.f32.mrf.mxu3 }
  0xbd   :  { %v531_v27 = vadd.f32 %v530_v25, %v517_v23 }
  0xca   :  { %v542_v20 = vpop.f32.mrf.mxu0 }
  0xcb   :  { %v556_v21 = vpop.f32.mrf.mxu1  ;;  %v543_v22 = vadd.f32 %v542_v20, %v529_v17 }
  0xcd   :  { %v557_v24 = vadd.f32 %v556_v21, %v543_v22 }
  0xcf   :  { %565 = vmax.xlane.f32.xlu0 %v557_v24  ;;  %v597_v36 = vsel %vm595_vm1, %v557_v24, 0.0 }
  0xd2   :  { %v544_v30 = vpop.f32.mrf.mxu0 }
  0xd3   :  { %v545_v31 = vadd.f32 %v544_v30, %v531_v27  ;;  %v558_v32 = vpop.f32.mrf.mxu1 }
  0xd5   :  { %v559_v33 = vadd.f32 %v558_v32, %v545_v31 }
  0xd7   :  { %567 = vmax.xlane.f32.xlu0 %v559_v33  ;;  %v598_v34 = vsel %vm596_vm0, %v559_v33, 0.0  ;;  %v967_v35 = vpack.c.bf16 %v559_v33, %v557_v24 }
  0xd8   :  { %601 = vadd.xlane.f32.xlu1 %v598_v34 }
  0xd9   :  { %968 = vst [vmem:[#allocation7] sm:$0xff] %v967_v35  }
  0xda   :  { %668 = dma.vmem_to_hbm [thread:$0]  %s661_s10, 128, %s663_s13, [#allocation4], %s1102_s30, %s1102_s30, %s1103_s6  }
  0xdf   :  { %599 = vadd.xlane.f32.xlu0 %v597_v36 }
  0xe7   :  { %640 = vadd.xlane.f32.xlu0 %v639_v51 }
 0x142   :  { %v566_v37 = vpop.xlane.xlu0 %565 }
 0x143   :  { %v569_v38 = vsub.f32 %v557_v24, %v566_v37 }
 0x145   :  { %v571_v39 = vmul.f32 1.442695, %v569_v38 }
 0x147   :  { %986 = vpow2.f32 %v571_v39 }
 0x14a   :  { %v568_v40 = vpop.xlane.xlu0 %567 }
 0x14b   :  { %v570_v41 = vsub.f32 %v559_v33, %v568_v40  ;;  %v602_v63 = vpop.xlane.xlu1 %601 }
 0x14d   :  { %v987_v42 = vpop.eup %986  ;;  %v573_v43 = vmul.f32 1.442695, %v570_v41 }
 0x14e   :  { %575 = vadd.xlane.f32.xlu2 %v987_v42 }
 0x14f   :  { %988 = vpow2.f32 %v573_v43 }
 0x152   :  { %v600_v59 = vpop.xlane.xlu0 %599 }
 0x155   :  { %v989_v44 = vpop.eup %988 }
 0x156   :  { %577 = vadd.xlane.f32.xlu2 %v989_v44 }
 0x15a   :  { %v641_v49 = vpop.xlane.xlu0 %640 }
 0x15b   :  { %v642_v54 = vrot.slane %v641_v49, 4 }
 0x15d   :  { %v643_v6 = vadd.f32 %v642_v54, %v641_v49 }
 0x15f   :  { %v644_v7 = vrot.slane %v643_v6, 2 }
 0x161   :  { %v645_v11 = vadd.f32 %v644_v7, %v643_v6 }
 0x163   :  { %v646_v14 = vrot.slane %v645_v11, 1 }
 0x165   :  { %v647_v17 = vadd.f32 %v646_v14, %v645_v11 }
 0x1c1   :  { %v576_v52 = vpop.xlane.xlu2 %575 }
 0x1c2   :  { %990 = vlog2.f32 %v576_v52 }
 0x1c8   :  { %v991_v53 = vpop.eup %990 }
 0x1c9   :  { %v580_v55 = vmul.f32 0.6931472, %v991_v53  ;;  %v578_v56 = vpop.xlane.xlu2 %577 }
 0x1ca   :  { %992 = vlog2.f32 %v578_v56 }
 0x1cb   :  { %v583_v57 = vadd.f32 %v580_v55, %v566_v37 }
 0x1cd   :  { %v616_v61 = vsub.f32 %v583_v57, %v600_v59 }
 0x1cf   :  { %v618_v1 = vsel %vm610_vm2, %v616_v61, 0.0 }
 0x1d0   :  { %v993_v58 = vpop.eup %992  ;;  %v621_v3 = vsel %vm620_vm4, %v618_v1, 0.0 }
 0x1d1   :  { %v582_v60 = vmul.f32 0.6931472, %v993_v58 }
 0x1d3   :  { %v584_v62 = vadd.f32 %v582_v60, %v568_v40 }
 0x1d5   :  { %v617_v0 = vsub.f32 %v584_v62, %v602_v63 }
 0x1d7   :  { %v619_v2 = vsel %vm611_vm3, %v617_v0, 0.0 }
 0x1d8   :  { %v622_v4 = vsel %vm620_vm4, %v619_v2, 0.0 }
 0x1d9   :  { %v623_v5 = vadd.f32 %v622_v4, %v621_v3 }
 0x1db   :  { %624 = vadd.xlane.f32.xlu2 %v623_v5 }
 0x24e   :  { %v625_v8 = vpop.xlane.xlu2 %624 }
 0x24f   :  { %v626_v9 = vrot.slane %v625_v8, 4 }
 0x251   :  { %v627_v10 = vadd.f32 %v626_v9, %v625_v8 }
 0x253   :  { %v628_v12 = vrot.slane %v627_v10, 2 }
 0x255   :  { %v629_v13 = vadd.f32 %v628_v12, %v627_v10 }
 0x257   :  { %v630_v15 = vrot.slane %v629_v13, 1 }
 0x259   :  { %v631_v16 = vadd.f32 %v630_v15, %v629_v13 }
 0x25b   :  { %969 = vpush %v631_v16 }
 0x25c   :  { %971 = vpush %v647_v17 }
 0x28c   :  { %s970_s15 = spop %969 }
 0x28d   :  { %v653_v18 = vstv %s970_s15  ;;  %s972_s19 = spop %971 }
 0x28e   :  { %v651_v19 = vstv %s972_s19 }
 0x28f   :  { %v652_v20 = vsel %vm650_vm5, %v651_v19, 0.0 }
 0x290   :  { %v654_v21 = vsel %vm649_vm6, %v653_v18, %v652_v20 }
 0x291   :  { %655 = vst [vmem:[#allocation8] sm:$0x1] %v654_v21 }
 0x292   :  { %679 = dma.vmem_to_hbm [thread:$0]  %s675_s14, 16, %s677_s18, [#allocation9]  }
 0x293   :  { %1094 = dma.done.wait [#allocation4], 128  }
 0x294   :  { %1095 = vsyncadd [#allocation4], 4294967168 }
 0x295   :  { %1096 = dma.done.wait [#allocation9], 16  }
 0x296   :  { %1097 = vsyncadd [#allocation9], 4294967280 }
 0x297   :  { %688 = vsyncpa [#allocation3], 1 }
 0x298   :  { %689 = vsyncpa [#allocation6], 1 }
 0x299   :  { %690 = vsyncpa [#allocation4], 1 }
 0x29a   :  { %691 = vsyncpa [#allocation9], 1 }

</bundles_post_ra>
